<compile_context>
chip_gen: v6e
topology: v6e:2x2x1
jax: 0.10.0
libtpu: 0.0.40
codegen_flags: <defaults>
</compile_context>

<pallas_src>
import jax
import jax.numpy as jnp
from jax.experimental import pallas as pl
from jax.experimental.pallas import tpu as pltpu


def _make_tour_kernel(nt, TI):
    """Builds the tour-length kernel for `nt` position tiles of width `TI`."""

    def kernel(x_ref, act_ref, out_ref, g_ref):
        # x_ref:   VMEM (bb, F, S) f32   -- cities, feature on sublanes, seq on lanes
        # act_ref: VMEM (bb, TI)  int32  -- tour indices for this tile of positions
        # out_ref: VMEM (bb, 1, 1) f32   -- closed tour length (written on last tile)
        # g_ref:   VMEM (bb, F, P) f32   -- scratch: gathered tour coordinates
        t = pl.program_id(1)
        x = x_ref[...]                       # (bb, F, S)
        a = act_ref[...]                     # (bb, TI)
        S = x.shape[2]

        # Single one-hot indicator of the tour indices for this position tile:
        #   oh[b, j, i] = [a[b, i] == j]
        # (small 2-D iota, broadcast against the action row; no (bb,S,S) temp.)
        j_iota = jax.lax.broadcasted_iota(jnp.int32, (S, TI), 0)
        oh = (a[:, None, :] == j_iota[None, :, :]).astype(jnp.float32)   # (bb, S, TI)

        # MXU "gather": g[b, f, i] = x[b, f, a[b, i]]   (exact: rows are one-hot)
        g_t = jnp.einsum('bfj,bji->bfi', x, oh,
                         preferred_element_type=jnp.float32)             # (bb, F, TI)

        if nt == 1:
            g_ref[...] = g_t
        else:
            i0 = pl.multiple_of(t * TI, TI)
            g_ref[:, :, pl.ds(i0, TI)] = g_t

        # Finalize: successor-minus-current via an in-kernel roll (closed tour,
        # so the roll direction does not change the total length).
        @pl.when(t == nt - 1)
        def _finalize():
            g = g_ref[...]                                               # (bb, F, P)
            d = jnp.roll(g, -1, axis=2) - g
            seg = jnp.sqrt(jnp.sum(d * d, axis=1, keepdims=True))        # (bb, 1, P)
            out_ref[...] = jnp.sum(seg, axis=2, keepdims=True)           # (bb, 1, 1)

    return kernel


def tour_length(inputs, actions):
    """Pallas reward: R[b] = closed tour length of inputs[b, actions[b]]."""
    B, S, F = inputs.shape

    # ---- VMEM budget (generation-safe: v5e / v6e / v7x) --------------------
    try:
        info = pltpu.get_tpu_info()
        vmem_cap = int(getattr(info, "vmem_capacity_bytes", 64 * 1024 * 1024))
    except Exception:
        vmem_cap = 64 * 1024 * 1024            # v7x per-core VMEM (smallest)
    vmem_limit = int(min(vmem_cap // 2, 32 * 1024 * 1024))
    # Dominant temporaries: the (bb, S, TI) f32 one-hot plus its compare/cast
    # temporaries -- budget 3x the one-hot and keep it to a quarter of the
    # scoped limit so double-buffered inputs + the g scratch still fit.
    budget_elems = max(1, (vmem_limit // 4) // (3 * 4))

    # ---- position-tile width TI (bounds the one-hot column count) ----------
    if S <= 512:
        TI = S
    else:
        TI = 512
        while TI > 128 and min(B, 8) * S * TI > budget_elems:
            TI //= 2                            # stays a multiple of 128
    nt = pl.cdiv(S, TI)
    P = nt * TI                                 # padded number of tour positions

    # ---- batch block bb -----------------------------------------------------
    bb = max(1, budget_elems // (S * TI))
    bb = min(bb, B, 256)
    if B >= 16 and bb > B // 2:
        # Keep >= 2 batch blocks so the "parallel" axis can shard across the
        # two TensorCores of a v7x chip (harmless on single-core generations).
        bb = B // 2
    if bb < B:
        bb = max(8, (bb // 8) * 8)              # sublane-aligned blocks when tiling batch
    else:
        bb = B
    nb = pl.cdiv(B, bb)
    B_pad = nb * bb

    # ---- layout & padding ---------------------------------------------------
    # Lane-friendly layout: seq on lanes, feature on sublanes.
    x_t = jnp.transpose(inputs.astype(jnp.float32), (0, 2, 1))      # (B, F, S)
    act = actions.astype(jnp.int32)                                 # (B, S)
    if P != S:
        # Pad tour positions by repeating the first index: the extra segments
        # have zero length, so the closed-tour length is unchanged (exact).
        act = jnp.concatenate(
            [act, jnp.broadcast_to(act[:, :1], (B, P - S))], axis=1)
    if B_pad != B:
        pad = B_pad - B
        x_t = jnp.pad(x_t, ((0, pad), (0, 0), (0, 0)))
        act = jnp.pad(act, ((0, pad), (0, 0)))

    out = pl.pallas_call(
        _make_tour_kernel(nt, TI),
        out_shape=jax.ShapeDtypeStruct((B_pad, 1, 1), jnp.float32),
        grid=(nb, nt),
        in_specs=[
            pl.BlockSpec((bb, F, S), lambda i, t: (i, 0, 0)),
            pl.BlockSpec((bb, TI), lambda i, t: (i, t)),
        ],
        out_specs=pl.BlockSpec((bb, 1, 1), lambda i, t: (i, 0, 0)),
        scratch_shapes=[pltpu.VMEM((bb, F, P), jnp.float32)],
        compiler_params=pltpu.CompilerParams(
            dimension_semantics=("parallel", "arbitrary"),
            vmem_limit_bytes=vmem_limit),
    )(x_t, act)

    return out.reshape(B_pad)[:B]


def actor(inputs, key):
    # TODO(synk): the reference module never defines self.actor (learned policy
    # network); stand-in: uniform probs, random permutation actions, identity
    # embeddings. Callers should not treat probs/embeddings as meaningful.
    B, S, _ = inputs.shape
    keys = jax.random.split(key, B)
    actions = jax.vmap(lambda k: jax.random.permutation(k, S))(keys)
    actions = actions.astype(jnp.int32)
    probs = jnp.full((B, S), 1.0 / S, dtype=jnp.float32)
    embeddings = inputs
    return probs, actions, embeddings


def solver_forward(inputs, key):
    """Mirrors Solver_Partial_tSNE.forward: returns (R, probs, actions, embeddings)."""
    probs, actions, embeddings = actor(inputs, key)
    R = tour_length(inputs, actions)   # reward(inputs.gather(1, actions...))
    return R, probs, actions, embeddings


if __name__ == "__main__":
    key = jax.random.PRNGKey(0)
    k_x, k_a = jax.random.split(key)
    B, S, F = 2, 8, 2   # batch x seq_len x feature (2-D city coordinates)
    inputs = jax.random.uniform(k_x, (B, S, F), dtype=jnp.float32)

    R, probs, actions, embeddings = solver_forward(inputs, k_a)
    jax.block_until_ready((R, probs, actions, embeddings))

    # Pure-JAX reference check of the Pallas reward kernel.
    idx = jnp.repeat(actions[..., None], F, axis=-1)
    gathered = jnp.take_along_axis(inputs, idx, axis=1)
    ref = jnp.sqrt(
        ((jnp.roll(gathered, -1, axis=1) - gathered) ** 2).sum(-1)).sum(-1)

    assert R.shape == (B,) and probs.shape == (B, S) and actions.shape == (B, S)
    assert embeddings.shape == inputs.shape
    assert jnp.allclose(R, ref, atol=1e-5), (R, ref)

    print("KERNEL_OK")
</pallas_src>

<mosaic_0001>
module attributes {stable_mosaic.version = 11 : i64} {
  func.func @kernel(%arg0: i32, %arg1: i32, %arg2: memref<2x2x8xf32, #tpu.memory_space<vmem>>, %arg3: memref<2x8xi32, #tpu.memory_space<vmem>>, %arg4: memref<2x1x1xf32, #tpu.memory_space<vmem>>, %arg5: memref<2x2x8xf32, #tpu.memory_space<vmem>>) attributes {dimension_semantics = [#tpu.dimension_semantics<parallel>, #tpu.dimension_semantics<arbitrary>], iteration_bounds = array<i64: 1, 1>, scalar_prefetch = 0 : i64, scratch_operands = 1 : i64, tpu.core_type = #tpu.core_type<tc>, window_params = [{transform_indices = @transform_0, window_bounds = array<i64: 2, 2, 8>}, {transform_indices = @transform_1, window_bounds = array<i64: 2, 8>}, {transform_indices = @transform_2, window_bounds = array<i64: 2, 1, 1>}]} {
    %c0 = arith.constant 0 : index
    %c0_0 = arith.constant 0 : index
    %c0_1 = arith.constant 0 : index
    %0 = vector.load %arg2[%c0, %c0_0, %c0_1] : memref<2x2x8xf32, #tpu.memory_space<vmem>>, vector<2x2x8xf32>
    %c0_2 = arith.constant 0 : index
    %c0_3 = arith.constant 0 : index
    %1 = vector.load %arg3[%c0_2, %c0_3] : memref<2x8xi32, #tpu.memory_space<vmem>>, vector<2x8xi32>
    %2 = tpu.iota {dimensions = array<i32: 0>} : vector<8x8xi32>
    %3 = vector.shape_cast %1 : vector<2x8xi32> to vector<2x1x8xi32>
    %4 = vector.shape_cast %2 : vector<8x8xi32> to vector<1x8x8xi32>
    %5 = vector.broadcast %3 : vector<2x1x8xi32> to vector<2x8x8xi32>
    %6 = vector.broadcast %4 : vector<1x8x8xi32> to vector<2x8x8xi32>
    %7 = arith.cmpi eq, %5, %6 : vector<2x8x8xi32>
    %8 = arith.extui %7 : vector<2x8x8xi1> to vector<2x8x8xi32>
    %9 = arith.sitofp %8 : vector<2x8x8xi32> to vector<2x8x8xf32>
    "tpu.trace_start"() <{level = 10 : i32, message = "bfj,bji->bfi"}> : () -> ()
    %cst = arith.constant dense<0.000000e+00> : vector<2x2x8xf32>
    %10 = tpu.matmul %0, %9, %cst {dimension_numbers = #tpu.dot_dimension_numbers<[2], [1], [1], [2], [0, 0, 0, 1, 1, 2], [0], [0]>} : vector<2x2x8xf32>, vector<2x8x8xf32>, vector<2x2x8xf32> -> vector<2x2x8xf32>
    "tpu.trace_stop"() : () -> ()
    %c0_4 = arith.constant 0 : index
    %c0_5 = arith.constant 0 : index
    %c0_6 = arith.constant 0 : index
    %11 = vector.load %arg5[%c0_4, %c0_5, %c0_6] : memref<2x2x8xf32, #tpu.memory_space<vmem>>, vector<2x2x8xf32>
    tpu.vector_store %arg5[%c0_4, %c0_5, %c0_6], %10 {strides = array<i32>} : memref<2x2x8xf32, #tpu.memory_space<vmem>>, vector<2x2x8xf32>,
    %c0_i32 = arith.constant 0 : i32
    %12 = arith.cmpi eq, %arg1, %c0_i32 : i32
    %13 = arith.extui %12 : i1 to i32
    %c0_i32_7 = arith.constant 0 : i32
    %14 = arith.cmpi ne, %13, %c0_i32_7 : i32
    scf.if %14 {
      %c0_8 = arith.constant 0 : index
      %c0_9 = arith.constant 0 : index
      %c0_10 = arith.constant 0 : index
      %15 = vector.load %arg5[%c0_8, %c0_9, %c0_10] : memref<2x2x8xf32, #tpu.memory_space<vmem>>, vector<2x2x8xf32>
      %16 = vector.extract_strided_slice %15 {offsets = [0, 0, 1], sizes = [2, 2, 7], strides = [1, 1, 1]} : vector<2x2x8xf32> to vector<2x2x7xf32>
      %17 = vector.extract_strided_slice %15 {offsets = [0, 0, 0], sizes = [2, 2, 1], strides = [1, 1, 1]} : vector<2x2x8xf32> to vector<2x2x1xf32>
      %18 = tpu.concatenate %16, %17 in 2 : vector<2x2x7xf32>, vector<2x2x1xf32> -> vector<2x2x8xf32>
      %19 = arith.subf %18, %15 : vector<2x2x8xf32>
      %20 = arith.mulf %19, %19 : vector<2x2x8xf32>
      %cst_11 = arith.constant dense<0.000000e+00> : vector<2x8xf32>
      %21 = vector.multi_reduction <add>, %20, %cst_11 [1] : vector<2x2x8xf32> to vector<2x8xf32>
      %22 = vector.shape_cast %21 : vector<2x8xf32> to vector<2x1x8xf32>
      %23 = math.sqrt %22 : vector<2x1x8xf32>
      %cst_12 = arith.constant dense<0.000000e+00> : vector<2x1xf32>
      %24 = vector.multi_reduction <add>, %23, %cst_12 [2] : vector<2x1x8xf32> to vector<2x1xf32>
      %25 = vector.shape_cast %24 : vector<2x1xf32> to vector<2x1x1xf32>
      %c0_13 = arith.constant 0 : index
      %c0_14 = arith.constant 0 : index
      %c0_15 = arith.constant 0 : index
      %26 = vector.load %arg4[%c0_13, %c0_14, %c0_15] : memref<2x1x1xf32, #tpu.memory_space<vmem>>, vector<2x1x1xf32>
      tpu.vector_store %arg4[%c0_13, %c0_14, %c0_15], %25 {strides = array<i32>} : memref<2x1x1xf32, #tpu.memory_space<vmem>>, vector<2x1x1xf32>,
    } else {
    }
    return
  }
  func.func @transform_0(%arg0: i32, %arg1: i32) -> (i32, i32, i32) {
    %c0_i32 = arith.constant 0 : i32
    %c0_i32_0 = arith.constant 0 : i32
    %c0_i32_1 = arith.constant 0 : i32
    return %arg0, %c0_i32, %c0_i32_0 : i32, i32, i32
  }
  func.func @transform_1(%arg0: i32, %arg1: i32) -> (i32, i32) {
    %c0_i32 = arith.constant 0 : i32
    return %arg0, %arg1 : i32, i32
  }
  func.func @transform_2(%arg0: i32, %arg1: i32) -> (i32, i32, i32) {
    %c0_i32 = arith.constant 0 : i32
    %c0_i32_0 = arith.constant 0 : i32
    %c0_i32_1 = arith.constant 0 : i32
    return %arg0, %c0_i32, %c0_i32_0 : i32, i32, i32
  }
}

</mosaic_0001>

<bundles_post_ra>
// kernel: tpu_custom_call.1
= control target key start
LH: loop header
LB: loop body
LE: loop exit
PB: predicated region body
PF: predicated region fallthrough
CT: control target
= control target key end

     0   :  { %7 = vsyncpa [#allocation4], 0  ;;  %s422_s0 = inlined_call_operand.hbm [shape: f32[2,2,8], index: 0, kind: input, shape index: {}]   ;;  %s423_s1 = inlined_call_operand.hbm [shape: s32[2,8], index: 1, kind: input, shape index: {}]   ;;  %s424_s2 = inlined_call_operand.vmem [shape: f32[2,1,1], index: 2, kind: output, shape index: {}]  }
   0x1   :  { %8 = vsyncpa [#allocation6], 0  ;;  %s377_s9 = smov [#allocation3]  }
   0x2   :  { %s14_s10 = sshll.u32 %s377_s9, 4  ;;  %s15_s10 = int_to_ptr.vmem [resolvable:$true] %s14_s10 }
   0x3   :  { %s341_s11 = scalar_lea.vmem %s15_s10, 64  ;;  %p346_p1 = scmp.lt.s32.totalorder %s15_s10, %s15_s10 }
   0x4   :  { %p342_p0 = scmp.ne.s32.totalorder %s15_s10, %s341_s11  ;;  %p347_p2 = scmp.lt.s32.totalorder %s341_s11, %s341_s11 }
   0x6   :  { %p348_p3 = por %p347_p2, %p346_p1 }
   0x8   :  { %p349_p4 = pnand %p348_p3, %p342_p0 }
   0xa   :  { %352 = shalt.err (!%p349_p4)
}
   0xb   :  { %s378_s12 = smov 32   ;;  %s379_s13 = smov 2  }
   0xc   :  { %20 = dma.hbm_to_vmem [thread:$0]  %s422_s0, 64, %s15_s10, [#allocation4], %s378_s12, %s378_s12, %s379_s13  }
   0xd   :  { %s380_s16 = smov [#allocation5]  }
   0xe   :  { %s27_s17 = sshll.u32 %s380_s16, 4  ;;  %s28_s17 = int_to_ptr.vmem [resolvable:$true] %s27_s17 }
   0xf   :  { %s361_s18 = scalar_lea.vmem %s28_s17, 32  ;;  %p366_p6 = scmp.lt.s32.totalorder %s28_s17, %s28_s17 }
  0x10   :  { %p362_p5 = scmp.ne.s32.totalorder %s28_s17, %s361_s18  ;;  %p367_p7 = scmp.lt.s32.totalorder %s361_s18, %s361_s18 }
  0x12   :  { %p368_p8 = por %p367_p7, %p366_p6 }
  0x14   :  { %p369_p9 = pnand %p368_p8, %p362_p5 }
  0x16   :  { %372 = shalt.err (!%p369_p9)
}
  0x17   :  { %30 = dma.hbm_to_vmem [thread:$0]  %s423_s1, 32, %s28_s17, [#allocation6]  }
  0x18   :  { %373 = dma.done.wait [#allocation4], 64  }
  0x19   :  { %374 = vsyncadd [#allocation4], 4294967232 }
  0x1a   :  { %375 = dma.done.wait [#allocation6], 32  }
  0x1b   :  { %376 = vsyncadd [#allocation6], 4294967264  ;;  %v40_v0 = vlaneseq  ;;  %v381_v1 = vmov 0.0   ;;  %v382_v2 = vmov 1966171168   ;;  %vm383_vm0 = vmmov 0  }
  0x1c   :  { %309 = vmatprep.subr.mxu0 %v381_v1  ;;  %v51_v3 = vunpack.c.l.s4 %v382_v2  ;;  %314 = vmatprep.subr.mxu1 %v381_v1  ;;  %v298_v8 = vld.sshfl [vmem:[#allocation5] sm:$0x11 pattern:$0x75316420]  ;;  %v37_v13 = vld [vmem:[#allocation3] sm:$0x3] }
  0x1d   :  { %v41_v4 = vshrl.u32 %v40_v0, 7  ;;  %311 = vmatprep.mubr.msk.f32.mxu0 %vm383_vm0, %v381_v1  ;;  %316 = vmatprep.mubr.msk.f32.mxu1 %vm383_vm0, %v381_v1  ;;  %v49_v10 = vcombine.high %v298_v8, %v298_v8  ;;  %vm78_vm1 = vcmask 64512   ;;  %v384_v15 = vmov 1.0   ;;  %v38_v16 = vld [vmem:[#allocation3 + $0x2] sm:$0x3]  ;;  %s385_s0 = smov 7  }
  0x1e   :  { %v52_v5 = vunpack.c.0.s8 %v51_v3  ;;  %vm225_vm4 = vcmask 58368   ;;  %s386_s1 = smov 127   ;;  %vm248_vm5 = vcmask 56320   ;;  %vm289_vm10 = vcmask 0  }
  0x1f   :  { %v66_v7 = vsub.s32 0, %v41_v4 }
  0x20   :  { %v55_v6 = vsub.s32 %v52_v5, %v41_v4 }
  0x22   :  { %v56_v9 = vrot.slane %v298_v8, %v55_v6  ;;  %v63_v12 = vrot.slane %v49_v10, %v55_v6 }
  0x24   :  { %v67_v11 = vrot.slane %v56_v9, %v66_v7  ;;  %v71_v14 = vrot.slane %v63_v12, %v66_v7 }
  0x26   :  { %vm72_vm2 = vcmp.eq.s32.totalorder %v67_v11, %v41_v4  ;;  %vm73_vm3 = vcmp.eq.s32.totalorder %v71_v14, %v41_v4 }
  0x27   :  { %310 = vmatpush3.msk.msra.mxu0 %vm72_vm2, %v384_v15  ;;  %315 = vmatpush3.msk.msra.mxu1 %vm73_vm3, %v384_v15 }
  0x28   :  { %312 = vmatmul.mubr.msk.f32.vlgmr.msra.gmra.mxu0 %vm78_vm1, %v37_v13  ;;  %317 = vmatmul.mubr.msk.f32.vlgmr.msra.gmra.mxu1 %vm78_vm1, %v38_v16 }
  0xe8   :  { %v148_v17 = vpop.f32.mrf.mxu0  ;;  %v221_v19 = vpop.f32.mrf.mxu1 }
  0xe9   :  { %226 = vst.msk [vmem:[#allocation2] sm:$0x3] %vm225_vm4, %v148_v17  ;;  %227 = vst.msk [vmem:[#allocation2 + $0x2] sm:$0x3] %vm225_vm4, %v221_v19 }
  0xea   :  { %v313_v18 = vpop.f32.mrf.mxu0  ;;  %v318_v20 = vpop.f32.mrf.mxu1 }
  0xf0   :  { %v232_v21 = vld [vmem:[#allocation2] sm:$0x3]  ;;  %v233_v22 = vld [vmem:[#allocation2 + $0x2] sm:$0x3] }
  0xf1   :  { %242 = vrot.lane.b32.xlu1 %v232_v21, %s385_s0  ;;  %236 = vrot.lane.b32.xlu0 %v232_v21, %s386_s1 }
  0xf5   :  { %244 = vrot.lane.b32.xlu1 %v233_v22, %s385_s0  ;;  %238 = vrot.lane.b32.xlu0 %v233_v22, %s386_s1 }
 0x163   :  { %v243_v23 = vpop.permute.xlu1 %242  ;;  %v237_v24 = vpop.permute.xlu0 %236 }
 0x164   :  { %v249_v25 = vsel %vm248_vm5, %v237_v24, %v243_v23 }
 0x165   :  { %v251_v26 = vsub.f32 %v249_v25, %v232_v21 }
 0x167   :  { %v253_v27 = vmul.f32 %v251_v26, %v251_v26  ;;  %v245_v28 = vpop.permute.xlu1 %244  ;;  %v239_v29 = vpop.permute.xlu0 %238 }
 0x168   :  { %v250_v30 = vsel %vm248_vm5, %v239_v29, %v245_v28 }
 0x169   :  { %v255_v31 = vsel %vm225_vm4, %v253_v27, 0.0  ;;  %v252_v32 = vsub.f32 %v250_v30, %v233_v22 }
 0x16a   :  { %v256_v33 = vrot.slane %v255_v31, 4 }
 0x16b   :  { %v254_v34 = vmul.f32 %v252_v32, %v252_v32 }
 0x16c   :  { %v257_v35 = vadd.f32 %v256_v33, %v255_v31 }
 0x16d   :  { %v262_v36 = vsel %vm225_vm4, %v254_v34, 0.0 }
 0x16e   :  { %v258_v37 = vrot.slane %v257_v35, 2  ;;  %v263_v38 = vrot.slane %v262_v36, 4 }
 0x170   :  { %v259_v39 = vadd.f32 %v258_v37, %v257_v35  ;;  %v264_v40 = vadd.f32 %v263_v38, %v262_v36 }
 0x172   :  { %v260_v41 = vrot.slane %v259_v39, 1  ;;  %v265_v42 = vrot.slane %v264_v40, 2 }
 0x174   :  { %v261_v43 = vadd.f32 %v260_v41, %v259_v39  ;;  %v266_v44 = vadd.f32 %v265_v42, %v264_v40 }
 0x176   :  { %v267_v45 = vrot.slane %v266_v44, 1  ;;  %329 = vrsqrt.f32 %v261_v43  ;;  %vm271_vm6 = vcmp.eq.f32.partialorder %v261_v43, inf  ;;  %v274_v49 = vand.u32 2147483648, %v261_v43 }
 0x177   :  { %vm273_vm7 = vcmp.eq.f32.partialorder %v261_v43, 0.0 }
 0x178   :  { %v268_v46 = vadd.f32 %v267_v45, %v266_v44 }
 0x17a   :  { %331 = vrsqrt.f32 %v268_v46  ;;  %vm278_vm8 = vcmp.eq.f32.partialorder %v268_v46, inf  ;;  %v281_v55 = vand.u32 2147483648, %v268_v46  ;;  %vm280_vm9 = vcmp.eq.f32.partialorder %v268_v46, 0.0 }
 0x183   :  { %v330_v47 = vpop.eup %329 }
 0x184   :  { %v270_v48 = vmul.f32 %v330_v47, %v261_v43 }
 0x186   :  { %v272_v50 = vsel %vm271_vm6, %v261_v43, %v270_v48 }
 0x187   :  { %v332_v51 = vpop.eup %331  ;;  %v275_v52 = vsel %vm273_vm7, %v274_v49, %v272_v50 }
 0x188   :  { %v283_v53 = vsel %vm78_vm1, %v275_v52, 0.0  ;;  %v277_v54 = vmul.f32 %v332_v51, %v268_v46 }
 0x189   :  { %284 = vadd.xlane.f32.xlu0 %v283_v53 }
 0x18a   :  { %v279_v56 = vsel %vm278_vm8, %v268_v46, %v277_v54 }
 0x18b   :  { %v282_v57 = vsel %vm280_vm9, %v281_v55, %v279_v56 }
 0x18c   :  { %v286_v58 = vsel %vm78_vm1, %v282_v57, 0.0 }
 0x18d   :  { %287 = vadd.xlane.f32.xlu1 %v286_v58 }
 0x212   :  { %v285_v59 = vpop.xlane.xlu0 %284 }
 0x213   :  { %290 = vst.msk [vmem:[%s424_s2] sm:$0x1] %vm289_vm10, %v285_v59 }
 0x216   :  { %v288_v60 = vpop.xlane.xlu1 %287 }
 0x217   :  { %291 = vst.msk [vmem:[%s424_s2 + $0x1] sm:$0x1] %vm289_vm10, %v288_v60 }
 0x218   :  { %296 = vsyncpa [#allocation4], 1 }
 0x219   :  { %297 = vsyncpa [#allocation6], 1 }

</bundles_post_ra>
